<compile_context>
chip_gen: v7x
topology: tpu7x:2x2x1
jax: 0.10.0
libtpu: 0.0.40
codegen_flags: <defaults>
</compile_context>

<pallas_src>
import jax
import jax.numpy as jnp
from jax.experimental import pallas as pl
from jax.experimental.pallas import tpu as pltpu

H = 32          # hidden width (module's global `H`)
TB = 128        # batch tile on the lane axis (multiple of 128 -> dense stores)


def mlp_kernel(x_ref, w12_ref, b12_ref, w3_ref, b3_ref, o_ref):
    # Feature-major layout: batch sits on the 128-lane axis.
    x = x_ref[...]                                                  # (1, TB)
    # Fused fc1+fc2 (exact).  K=1 contraction == outer product -> VPU
    # broadcast-multiply, then bias add + ReLU, all elementwise.
    h = jnp.maximum(w12_ref[...] * x + b12_ref[...], 0.0)          # (H, TB)
    # fc3: N=1 contraction == per-lane dot over H -> elementwise multiply
    # plus a sublane (XLU) reduction; no MXU involved.
    out = jnp.sum(h * w3_ref[...], axis=0, keepdims=True) + b3_ref[...]  # (1, TB)
    o_ref[...] = out.astype(o_ref.dtype)


def net_forward(x, w1, b1, w2, b2, w3, b3, *, tb=TB):
    """Forward pass of `Net`.

    x: (B, 1) float32.
    Params are in PyTorch nn.Linear layout:
      w1 (H, 1), b1 (H,), w2 (H, H), b2 (H,), w3 (1, H), b3 (1,)
    (nn.Linear computes y = x @ W.T + b).
    """
    B = x.shape[0]

    # Host/XLA-side algebraic fusion of fc1 and fc2 (exact: ReLU is the only
    # nonlinearity and it sits after fc2).
    w12 = (w2 @ w1).astype(jnp.float32)                       # (H, 1)
    b12 = (w2 @ b1 + b2).reshape(H, 1).astype(jnp.float32)    # (H, 1)
    w3c = w3.reshape(H, 1).astype(jnp.float32)                # (H, 1)
    b3m = b3.reshape(1, 1).astype(jnp.float32)                # (1, 1)

    # Batch-major (B, 1) -> lane-major (1, B_padded): batch on the lane axis,
    # zero-padded to a multiple of the batch tile.
    nb = pl.cdiv(B, tb)
    bp = nb * tb
    x_row = jnp.zeros((1, bp), jnp.float32).at[0, :B].set(x[:, 0])

    out_row = pl.pallas_call(
        mlp_kernel,
        out_shape=jax.ShapeDtypeStruct((1, bp), jnp.float32),
        grid=(nb,),
        in_specs=[
            pl.BlockSpec((1, tb), lambda i: (0, i)),   # x batch tile (lane-dense)
            pl.BlockSpec((H, 1), lambda i: (0, 0)),    # fused W12 (VMEM-resident)
            pl.BlockSpec((H, 1), lambda i: (0, 0)),    # fused b12
            pl.BlockSpec((H, 1), lambda i: (0, 0)),    # w3 (as column)
            pl.BlockSpec((1, 1), lambda i: (0, 0)),    # b3
        ],
        out_specs=pl.BlockSpec((1, tb), lambda i: (0, i)),
        compiler_params=pltpu.CompilerParams(
            dimension_semantics=("parallel",)),        # megacore shard on v7x
    )(x_row, w12, b12, w3c, b3m)

    # Back to PyTorch layout (B, 1).
    return out_row[0, :B].reshape(B, 1)


def init_params(key):
    # Deterministic synthetic init, PyTorch nn.Linear layout (out, in) / (out,).
    k1, k2, k3, k4, k5, k6 = jax.random.split(key, 6)
    scale = 0.1
    w1 = scale * jax.random.normal(k1, (H, 1), jnp.float32)
    b1 = scale * jax.random.normal(k2, (H,), jnp.float32)
    w2 = scale * jax.random.normal(k3, (H, H), jnp.float32)
    b2 = scale * jax.random.normal(k4, (H,), jnp.float32)
    w3 = scale * jax.random.normal(k5, (1, H), jnp.float32)
    b3 = scale * jax.random.normal(k6, (1,), jnp.float32)
    return w1, b1, w2, b2, w3, b3


def torch_ref(x, w1, b1, w2, b2, w3, b3):
    # Pure-JAX replica of the PyTorch forward (nn.Linear: y = x @ W.T + b).
    h1 = x @ w1.T + b1
    h2 = jnp.maximum(h1 @ w2.T + b2, 0.0)
    return h2 @ w3.T + b3


if __name__ == "__main__":
    key = jax.random.PRNGKey(0)
    kx, kp = jax.random.split(key)

    BATCH = 300   # exercises padding + a multi-tile ("parallel") batch grid
    x = jax.random.normal(kx, (BATCH, 1), jnp.float32)
    params = init_params(kp)

    out = net_forward(x, *params)
    out = jax.block_until_ready(out)

    ref = torch_ref(x, *params)
    assert out.shape == (BATCH, 1)
    assert jnp.allclose(out, ref, atol=1e-4, rtol=1e-4), (
        float(jnp.max(jnp.abs(out - ref))))

    print("KERNEL_OK")
</pallas_src>

<mosaic_0001>
module attributes {stable_mosaic.version = 11 : i64} {
  func.func @mlp_kernel(%arg0: i32, %arg1: memref<1x128xf32, #tpu.memory_space<vmem>>, %arg2: memref<32x1xf32, #tpu.memory_space<vmem>>, %arg3: memref<32x1xf32, #tpu.memory_space<vmem>>, %arg4: memref<32x1xf32, #tpu.memory_space<vmem>>, %arg5: memref<1x1xf32, #tpu.memory_space<vmem>>, %arg6: memref<1x128xf32, #tpu.memory_space<vmem>>) attributes {dimension_semantics = [#tpu.dimension_semantics<parallel>], iteration_bounds = array<i64: 3>, scalar_prefetch = 0 : i64, scratch_operands = 0 : i64, tpu.core_type = #tpu.core_type<tc>, window_params = [{transform_indices = @transform_0, window_bounds = array<i64: 1, 128>}, {pipeline_mode = #tpu.pipeline_mode<synchronous>, transform_indices = @transform_1, window_bounds = array<i64: 32, 1>}, {pipeline_mode = #tpu.pipeline_mode<synchronous>, transform_indices = @transform_2, window_bounds = array<i64: 32, 1>}, {pipeline_mode = #tpu.pipeline_mode<synchronous>, transform_indices = @transform_3, window_bounds = array<i64: 32, 1>}, {pipeline_mode = #tpu.pipeline_mode<synchronous>, transform_indices = @transform_4, window_bounds = array<i64: 1, 1>}, {transform_indices = @transform_5, window_bounds = array<i64: 1, 128>}]} {
    %c0 = arith.constant 0 : index
    %c0_0 = arith.constant 0 : index
    %0 = vector.load %arg1[%c0, %c0_0] : memref<1x128xf32, #tpu.memory_space<vmem>>, vector<1x128xf32>
    %c0_1 = arith.constant 0 : index
    %c0_2 = arith.constant 0 : index
    %1 = vector.load %arg2[%c0_1, %c0_2] : memref<32x1xf32, #tpu.memory_space<vmem>>, vector<32x1xf32>
    %2 = vector.broadcast %1 : vector<32x1xf32> to vector<32x128xf32>
    %3 = vector.broadcast %0 : vector<1x128xf32> to vector<32x128xf32>
    %4 = arith.mulf %2, %3 : vector<32x128xf32>
    %c0_3 = arith.constant 0 : index
    %c0_4 = arith.constant 0 : index
    %5 = vector.load %arg3[%c0_3, %c0_4] : memref<32x1xf32, #tpu.memory_space<vmem>>, vector<32x1xf32>
    %6 = vector.broadcast %5 : vector<32x1xf32> to vector<32x128xf32>
    %7 = arith.addf %4, %6 : vector<32x128xf32>
    %cst = arith.constant 0.000000e+00 : f32
    %8 = vector.broadcast %cst : f32 to vector<32x128xf32>
    %9 = arith.maximumf %7, %8 : vector<32x128xf32>
    %c0_5 = arith.constant 0 : index
    %c0_6 = arith.constant 0 : index
    %10 = vector.load %arg4[%c0_5, %c0_6] : memref<32x1xf32, #tpu.memory_space<vmem>>, vector<32x1xf32>
    %11 = vector.broadcast %10 : vector<32x1xf32> to vector<32x128xf32>
    %12 = arith.mulf %9, %11 : vector<32x128xf32>
    %cst_7 = arith.constant dense<0.000000e+00> : vector<128xf32>
    %13 = vector.multi_reduction <add>, %12, %cst_7 [0] : vector<32x128xf32> to vector<128xf32>
    %14 = vector.shape_cast %13 : vector<128xf32> to vector<1x128xf32>
    %c0_8 = arith.constant 0 : index
    %c0_9 = arith.constant 0 : index
    %15 = vector.load %arg5[%c0_8, %c0_9] : memref<1x1xf32, #tpu.memory_space<vmem>>, vector<1x1xf32>
    %16 = vector.broadcast %15 : vector<1x1xf32> to vector<1x128xf32>
    %17 = arith.addf %14, %16 : vector<1x128xf32>
    %c0_10 = arith.constant 0 : index
    %c0_11 = arith.constant 0 : index
    %18 = vector.load %arg6[%c0_10, %c0_11] : memref<1x128xf32, #tpu.memory_space<vmem>>, vector<1x128xf32>
    tpu.vector_store %arg6[%c0_10, %c0_11], %17 {strides = array<i32>} : memref<1x128xf32, #tpu.memory_space<vmem>>, vector<1x128xf32>,
    return
  }
  func.func @transform_0(%arg0: i32) -> (i32, i32) {
    %c0_i32 = arith.constant 0 : i32
    %c0_i32_0 = arith.constant 0 : i32
    return %c0_i32, %arg0 : i32, i32
  }
  func.func @transform_1(%arg0: i32) -> (i32, i32) {
    %c0_i32 = arith.constant 0 : i32
    %c0_i32_0 = arith.constant 0 : i32
    %c0_i32_1 = arith.constant 0 : i32
    return %c0_i32, %c0_i32_0 : i32, i32
  }
  func.func @transform_2(%arg0: i32) -> (i32, i32) {
    %c0_i32 = arith.constant 0 : i32
    %c0_i32_0 = arith.constant 0 : i32
    %c0_i32_1 = arith.constant 0 : i32
    return %c0_i32, %c0_i32_0 : i32, i32
  }
  func.func @transform_3(%arg0: i32) -> (i32, i32) {
    %c0_i32 = arith.constant 0 : i32
    %c0_i32_0 = arith.constant 0 : i32
    %c0_i32_1 = arith.constant 0 : i32
    return %c0_i32, %c0_i32_0 : i32, i32
  }
  func.func @transform_4(%arg0: i32) -> (i32, i32) {
    %c0_i32 = arith.constant 0 : i32
    %c0_i32_0 = arith.constant 0 : i32
    %c0_i32_1 = arith.constant 0 : i32
    return %c0_i32, %c0_i32_0 : i32, i32
  }
  func.func @transform_5(%arg0: i32) -> (i32, i32) {
    %c0_i32 = arith.constant 0 : i32
    %c0_i32_0 = arith.constant 0 : i32
    return %c0_i32, %arg0 : i32, i32
  }
}

</mosaic_0001>

<bundles_post_ra>
// kernel: tpu_custom_call.1
= control target key start
LH: loop header
LB: loop body
LE: loop exit
PB: predicated region body
PF: predicated region fallthrough
CT: control target
= control target key end

     0   :  { %s684_s0 = inlined_call_operand.vmem [shape: f32[1,384], index: 0, kind: input, shape index: {}]   ;;  %s685_s1 = inlined_call_operand.vmem [shape: f32[32,1], index: 1, kind: input, shape index: {}]   ;;  %s686_s2 = inlined_call_operand.vmem [shape: f32[32,1], index: 2, kind: input, shape index: {}]   ;;  %s687_s3 = inlined_call_operand.vmem [shape: f32[32,1], index: 3, kind: input, shape index: {}]   ;;  %s688_s4 = inlined_call_operand.<no memory space> [shape: f32[1,1], index: 4, kind: input, shape index: {}]   ;;  %s689_s5 = inlined_call_operand.hbm [shape: f32[1,384], index: 5, kind: output, shape index: {}]  }
   0x1   :  { %v10_v0 = vstv %s688_s4 }
   0x2   :  { %11 = vst [vmem:[#allocation2] sm:$0x1] %v10_v0 }
   0x3   :  { %12 = vsyncpa [#allocation4], 0 }
   0x4   :  { %14 = vsyncpa [#allocation4 + $0x1], 0  ;;  %s548_s20 = smov 0   ;;  %s550_s21 = smov 0  }
   0x5   :  { %s552_s22 = smov 0   ;;  %s554_s23 = smov 0  }
   0x6 LB: > { %s569_s4 = sadd.s32 4294967295, %s511_s23   ;;  %s399_s24 = sadd.s32 4294967294, %s511_s23   ;;  %s511_s23 = sphi %s554_s23, %s695_s23   ;;  %s507_s22 = sphi %s552_s22, %s694_s22   ;;  %s503_s21 = sphi %s550_s21, %s693_s21   ;;  %s499_s20 = sphi %s548_s20, %s692_s20  }
   0x7   : > { %s573_s25 = sadd.s32 1, %s511_s23   ;;  %s137_s26 = sadd.s32 1, %s507_s22 }
   0x8   : > { %s134_s27 = ssub.s32 %s511_s23, %s573_s25  ;;  %p147_p0 = scmp.ne.s32.totalorder %s507_s22, %s503_s21 }
   0x9   : > { %p135_p1 = scmp.eq.s32.totalorder %s134_s27, 0  ;;  %p148_p2 = scmp.eq.s32.totalorder %s569_s4, 2 }
   0xa   : > { %p153_p3 = scmp.ne.s32.totalorder %s503_s21, %s499_s20  ;;  %p154_p4 = scmp.eq.s32.totalorder %s399_s24, 2 }
   0xb   : > { %s584_s28 = scalar_select %p135_p1, %s507_s22, %s137_s26  }
   0xc   : > { %p586_p5 = por %p148_p2, %p147_p0  ;;  %p590_p6 = por %p154_p4, %p153_p3 }
   0xd   : > { %p402_p7 = scmp.ge.s32.totalorder %s511_s23, 1  ;;  %p190_p8 = scmp.lt.s32.totalorder %s511_s23, 4 }
   0xf   : > { %p191_p9 = pnand %p402_p7, %p190_p8 }
  0x10   : > { %v221_v1 = vld [vmem:[%s685_s1 + $0x10] sm:$0xff] (!%p191_p9)  ;;  %v219_v2 = vld [vmem:[%s685_s1] sm:$0xff] (!%p191_p9)  ;;  %v513_v3 = vmov (!%p191_p9), 0   ;;  %v220_v5 = vld [vmem:[%s685_s1 + $0x8] sm:$0xff] (!%p191_p9)  ;;  %p215_p10 = scmp.lt.s32.totalorder (!%p191_p9), %s569_s4, 2  ;;  %v328_v47 = vlaneseq (!%p191_p9)  ;;  %s213_s17 = sand.u32 (!%p191_p9), 1, %s503_s21  }
  0x11   : > { %194 = sbr.rel (%p191_p9) target bundleno = 200 (0xc8), region = 40  ;;  %448 = vset.pattern.permute.xlu1 (!%p191_p9), %v513_v3  ;;  %447 = vset.pattern.permute.xlu0 (!%p191_p9), %v513_v3  ;;  %v253_v4 = vld [vmem:[%s686_s2] sm:$0xff] (!%p191_p9)  ;;  %v222_v6 = vld [vmem:[%s685_s1 + $0x18] sm:$0xff] (!%p191_p9)  ;;  %v254_v7 = vld [vmem:[%s686_s2 + $0x8] sm:$0xff] (!%p191_p9)  ;;  %s404_s18 = sshll.u32 (!%p191_p9), %s569_s4, 4 }
  0x12   : > { %235 = vperm.xlu1 (!%p191_p9), %448, %v221_v1   ;;  %225 = vperm.xlu0 (!%p191_p9), %447, %v219_v2   ;;  %v256_v8 = vld [vmem:[%s686_s2 + $0x18] sm:$0xff] (!%p191_p9)  ;;  %v255_v9 = vld [vmem:[%s686_s2 + $0x10] sm:$0xff] (!%p191_p9)  ;;  %v286_v10 = vld [vmem:[%s687_s3 + $0x8] sm:$0xff] (!%p191_p9)  ;;  %v329_v50 = vshrl.u32 (!%p191_p9), %v328_v47, 7  ;;  %s214_s19 = scalar_lea.vmem (!%p191_p9), [#allocation3], %s213_s17  ;;  %s642_s6 = scalar_lea.hbm (!%p191_p9), %s689_s5, %s404_s18 }
  0x13   : > { %v285_v11 = vld [vmem:[%s687_s3] sm:$0xff] (!%p191_p9)  ;;  %v288_v12 = vld [vmem:[%s687_s3 + $0x18] sm:$0xff] (!%p191_p9)  ;;  %v287_v13 = vld [vmem:[%s687_s3 + $0x10] sm:$0xff] (!%p191_p9)  ;;  %s347_s24 = sshll.u32 (!%p191_p9), %s214_s19, 4  ;;  %s335_s7 = scalar_lea.sflag (!%p191_p9), [#allocation4], %s213_s17  ;;  %s644_s24 = int_to_ptr.vmem [resolvable:$true] %s347_s24 }
  0x14   : > { %v322_v14 = vld [vmem:[#allocation2] sm:$0x1] (!%p191_p9)  ;;  %v330_v52 = vsub.s32 (!%p191_p9), 0, %v329_v50  ;;  %s449_s8 = scalar_lea.vmem (!%p191_p9), %s644_s24, 16 }
  0x15   : > { %p450_p11 = scmp.ne.s32.totalorder (!%p191_p9), %s644_s24, %s449_s8 }
  0x16   : > { %259 = vperm.xlu1 (!%p191_p9), %448, %v253_v4   ;;  %230 = vperm.xlu0 (!%p191_p9), %447, %v220_v5  }
  0x17   : > { %p451_p12 = pnand (!%p191_p9), %p450_p11, %p586_p5 }
  0x18   : > { %s216_s13 = scalar_select %p215_p10, %s569_s4, 2 }
  0x19   : > { %p452_p13 = pneg %p451_p12  ;;  %s514_s4 = smov [#allocation3]  }
  0x1a   : > { %240 = vperm.xlu1 %448, %v222_v6   ;;  %264 = vperm.xlu0 %447, %v254_v7   ;;  %s217_s16 = scalar_lea.vmem %s684_s0, %s216_s13  ;;  %s453_s9 = sshll.u32 %s514_s4, 4  ;;  %s454_s9 = int_to_ptr.vmem [resolvable:$false] %s453_s9 }
  0x1b   : > { %v403_v19 = vld [vmem:[%s217_s16] ss:$0 sm:$0xff]  ;;  %s455_s10 = scalar_lea.vmem %s454_s9, 32  ;;  %p456_p0 = scmp.lt.s32.totalorder %s644_s24, %s454_s9 }
  0x1c   : > { %p457_p1 = scmp.lt.s32.totalorder %s455_s10, %s449_s8 }
  0x1e   : > { %274 = vperm.xlu1 %448, %v256_v8   ;;  %269 = vperm.xlu0 %447, %v255_v9   ;;  %p458_p2 = por %p457_p1, %p456_p0 }
  0x20   : > { %p459_p3 = pnand %p458_p2, %p452_p13 }
  0x22   : > { %296 = vperm.xlu1 %448, %v286_v10   ;;  %291 = vperm.xlu0 %447, %v285_v11  }
  0x26   : > { %306 = vperm.xlu1 %448, %v288_v12   ;;  %301 = vperm.xlu0 %447, %v287_v13  }
  0x2a   : > { %325 = vperm.xlu0 %447, %v322_v14  }
  0x91   : > { %v236_v15 = vpop.permute.xlu1 %235  ;;  %v226_v16 = vpop.permute.xlu0 %225 }
  0x92   : > { %v249_v22 = vmul.f32 %v403_v19, %v226_v16  ;;  %v251_v28 = vmul.f32 %v403_v19, %v236_v15 }
  0x95   : > { %v260_v17 = vpop.permute.xlu1 %259  ;;  %v231_v18 = vpop.permute.xlu0 %230 }
  0x96   : > { %v250_v23 = vmul.f32 %v403_v19, %v231_v18  ;;  %v277_v24 = vadd.f32 %v260_v17, %v249_v22 }
  0x98   : > { %v281_v29 = vmax.f32 %v277_v24, 0.0 }
  0x99   : > { %v241_v20 = vpop.permute.xlu1 %240  ;;  %v265_v21 = vpop.permute.xlu0 %264 }
  0x9a   : > { %v278_v25 = vadd.f32 %v265_v21, %v250_v23  ;;  %v252_v30 = vmul.f32 %v403_v19, %v241_v20 }
  0x9c   : > { %v282_v31 = vmax.f32 %v278_v25, 0.0 }
  0x9d   : > { %v275_v26 = vpop.permute.xlu1 %274  ;;  %v270_v27 = vpop.permute.xlu0 %269 }
  0x9e   : > { %v279_v32 = vadd.f32 %v270_v27, %v251_v28  ;;  %v280_v35 = vadd.f32 %v275_v26, %v252_v30 }
  0xa0   : > { %v283_v38 = vmax.f32 %v279_v32, 0.0  ;;  %v284_v41 = vmax.f32 %v280_v35, 0.0 }
  0xa1   : > { %v297_v33 = vpop.permute.xlu1 %296  ;;  %v292_v34 = vpop.permute.xlu0 %291 }
  0xa2   : > { %v310_v36 = vmul.f32 %v297_v33, %v282_v31  ;;  %v309_v37 = vmul.f32 %v292_v34, %v281_v29 }
  0xa4   : > { %v313_v42 = vadd.f32 %v310_v36, %v309_v37 }
  0xa5   : > { %v307_v39 = vpop.permute.xlu1 %306  ;;  %v302_v40 = vpop.permute.xlu0 %301 }
  0xa6   : > { %v311_v43 = vmul.f32 %v302_v40, %v283_v38  ;;  %v312_v44 = vmul.f32 %v307_v39, %v284_v41 }
  0xa8   : > { %v314_v45 = vadd.f32 %v313_v42, %v311_v43 }
  0xa9   : > { %v326_v54 = vpop.permute.xlu0 %325 }
  0xaa   : > { %v315_v46 = vadd.f32 %v314_v45, %v312_v44  ;;  %v331_v57 = vrot.slane %v326_v54, %v330_v52 }
  0xac   : > { %v316_v48 = vrot.slane %v315_v46, 4 }
  0xae   : > { %v317_v49 = vadd.f32 %v316_v48, %v315_v46 }
  0xb0   : > { %v318_v51 = vrot.slane %v317_v49, 2 }
  0xb2   : > { %v319_v53 = vadd.f32 %v318_v51, %v317_v49 }
  0xb4   : > { %v320_v55 = vrot.slane %v319_v53, 1 }
  0xb6   : > { %v321_v56 = vadd.f32 %v320_v55, %v319_v53 }
  0xb8   : > { %v332_v58 = vadd.f32 %v331_v57, %v321_v56 }
  0xba   : > { %333 = vst [vmem:[%s214_s19] sm:$0x1] %v332_v58 }
  0xbb   : > { %462 = shalt.err (!%p459_p3)
}
  0xbc   : > { %s463_s11 = scalar_lea.hbm %s642_s6, 16  ;;  %s467_s14 = scalar_lea.hbm %s689_s5, 48 }
  0xbd   : > { %p464_p4 = scmp.ne.s32.totalorder %s642_s6, %s463_s11  ;;  %p468_p9 = scmp.lt.u32.totalorder %s642_s6, %s689_s5 }
  0xbe   : > { %p469_p10 = scmp.lt.u32.totalorder %s467_s14, %s463_s11  ;;  %p471_p12 = scmp.lt.u32.totalorder %s463_s11, %s642_s6 }
  0xbf   : > { %p465_p7 = pnand %p464_p4, %p586_p5 }
  0xc0   : > { %p470_p11 = por %p469_p10, %p468_p9 }
  0xc1   : > { %p466_p8 = pneg %p465_p7 }
  0xc2   : > { %p472_p13 = por %p471_p12, %p470_p11 }
  0xc4   : > { %p473_p0 = pnand %p472_p13, %p466_p8 }
  0xc6   : > { %476 = shalt.err (!%p473_p0)
}
  0xc7   : > { %407 = dma.vmem_to_hbm [thread:$0]  (%p586_p5), %s644_s24, 16, %s642_s6, %s335_s7  }
  0xc8 PF: > { %p413_p1 = scmp.ge.s32.totalorder %s511_s23, 2  ;;  %s359_s17 = sand.u32 1, %s499_s20  }
  0xc9   : > { %s360_s18 = scalar_lea.sflag [#allocation4], %s359_s17 }
  0xca   : > { %p410_p2 = pnand %p413_p1, %p590_p6 }
  0xcc   : > { %494 = dma.done.wait (!%p410_p2), %s360_s18, 16  }
  0xcd   : > { %496 = vsyncadd (!%p410_p2), %s360_s18, 4294967280  ;;  %p17_p3 = scmp.ge.s32.totalorder %s573_s25, 5   ;;  %s692_s20 = smov %s503_s21 }
  0xce   : > { %s693_s21 = smov %s507_s22  ;;  %s694_s22 = smov %s584_s28 }
  0xcf   : > { %s695_s23 = smov %s573_s25  ;;  %19 = sbr.rel (!%p17_p3) target bundleno = 6 (0x6), region = 75 }
  0xd6   :  { %364 = vsyncpa [#allocation4], 1 }
  0xd7   :  { %366 = vsyncpa [#allocation4 + $0x1], 1 }

</bundles_post_ra>
